<compile_context>
chip_gen: v7x
topology: tpu7x:2x2x1
jax: 0.10.0
libtpu: 0.0.40
codegen_flags: <defaults>
</compile_context>

<pallas_src>
import functools
import math

import numpy as np
import jax
import jax.numpy as jnp
from jax import lax
from jax.experimental import pallas as pl
from jax.experimental.pallas import tpu as pltpu


def _round_up(x: int, m: int) -> int:
    return ((int(x) + m - 1) // m) * m


def _src_taps_np(in_size, out_size, out_start, n_rows):
    """Vectorized PyTorch bilinear (align_corners=False) taps for outputs
    [out_start, out_start + n_rows).  Returns (valid, x0, x1, frac)."""
    o = np.arange(out_start, out_start + n_rows, dtype=np.float64)
    valid = o < out_size
    src = np.maximum((o + 0.5) * (float(in_size) / float(out_size)) - 0.5, 0.0)
    x0 = np.minimum(np.floor(src).astype(np.int64), in_size - 1)
    x1 = np.minimum(x0 + 1, in_size - 1)
    frac = src - x0
    return valid, x0, x1, frac


def _tap_span(in_size, out_size, out_start, n_rows):
    """Inclusive input range needed by output rows [out_start, out_start+n_rows)."""
    valid, x0, x1, _ = _src_taps_np(in_size, out_size, out_start, n_rows)
    if not valid.any():
        return 0, 0
    return int(x0[valid].min()), int(x1[valid].max())


def _bilinear_band(in_size, out_size, n_rows, out_start, band_start, band_size):
    """(n_rows, band_size) interpolation weights; output rows >= out_size are zero
    (this realizes the batched_image zero padding).  Columns are input indices
    relative to band_start."""
    valid, x0, x1, frac = _src_taps_np(in_size, out_size, out_start, n_rows)
    w = np.zeros((n_rows, band_size), np.float32)
    rows = np.arange(n_rows)[valid]
    x0v, x1v, fv = x0[valid], x1[valid], frac[valid]
    assert (x0v >= band_start).all() and (x1v < band_start + band_size).all()
    np.add.at(w, (rows, x0v - band_start), (1.0 - fv).astype(np.float32))
    np.add.at(w, (rows, x1v - band_start), fv.astype(np.float32))
    return w


def _fit_band_block(firsts, lasts, max_in, align):
    """Smallest block size (multiple of `align`) such that every [first, last]
    band fits inside one block-aligned window; capped at the full extent."""
    cap = _round_up(max_in, align)
    bs = max(align, _round_up(int((lasts - firsts).max()) + 1, align))
    # TODO(synk): element-offset band starts would avoid this block-alignment
    # inflation when a band straddles an aligned boundary.
    while bs < cap and np.any((firsts // bs) * bs + bs <= lasts):
        bs += align
    return min(bs, cap)


def _vmem_capacity_bytes() -> int:
    try:
        info = pltpu.get_tpu_info()
        cap = int(getattr(info, "vmem_capacity_bytes", 0) or 0)
        if cap > 0:
            return cap
    except Exception:
        pass
    return 64 << 20   # conservative fallback (v7x per-core VMEM)


def _norm_resize_pad_kernel(hb_ref, wb_ref, oh_ref, ow_ref, msc_ref, isd_ref,
                            img_ref, wh_ref, wwt_ref, out_ref, *,
                            h_first, compute_dtype):
    """One (image n, H tile, W tile) step: fused resize + normalize + pad,
    all channels in the block."""
    n = pl.program_id(0)
    th = pl.program_id(1)
    tw = pl.program_id(2)
    C = out_ref.shape[1]
    TH = out_ref.shape[2]
    TW = out_ref.shape[3]

    wh = wh_ref[0, 0]      # (TH, BH)  band-relative bilinear rows
    wwt = wwt_ref[0, 0]    # (BW, TW)  band-relative bilinear cols (transposed)

    # resize(1) == validity mask (bilinear weights of valid rows/cols sum to 1,
    # pad rows/cols are all-zero).  Rebuilt from per-image scalars -> no per-step
    # colsum over the weight blocks.
    oh = oh_ref[n]
    ow = ow_ref[n]
    ridx = lax.broadcasted_iota(jnp.int32, (TH, TW), 0) + th * TH
    cidx = lax.broadcasted_iota(jnp.int32, (TH, TW), 1) + tw * TW
    maskf = jnp.where(jnp.logical_and(ridx < oh, cidx < ow),
                      jnp.float32(1.0), jnp.float32(0.0))

    if h_first:
        # y_c = (Wh @ x_c) @ WwT per channel (M = TH fills the MXU rows well).
        for c in range(C):
            x = img_ref[0, c]                                        # (BH, BW)
            t = jnp.dot(wh, x, preferred_element_type=jnp.float32)
            y = jnp.dot(t.astype(compute_dtype), wwt,
                        preferred_element_type=jnp.float32)          # (TH, TW)
            out_ref[0, c] = (y * isd_ref[c]
                             - msc_ref[c] * maskf).astype(out_ref.dtype)
    else:
        # One (C*BH, BW) @ (BW, TW) matmul shared by all channels, then
        # per-channel Wh application.
        x_all = img_ref[0]                                           # (C, BH, BW)
        BH, BW = x_all.shape[1], x_all.shape[2]
        t_all = jnp.dot(x_all.reshape(C * BH, BW), wwt,
                        preferred_element_type=jnp.float32)          # (C*BH, TW)
        t_all = t_all.reshape(C, BH, TW).astype(compute_dtype)
        for c in range(C):
            y = jnp.dot(wh, t_all[c], preferred_element_type=jnp.float32)
            out_ref[0, c] = (y * isd_ref[c]
                             - msc_ref[c] * maskf).astype(out_ref.dtype)


def batched_normalize_resize_pad(images, resized_sizes, pad_h, pad_w, mean, std,
                                 compute_dtype=jnp.bfloat16):
    """images: list of (C, H_i, W_i) float arrays. Returns (N, C, pad_h, pad_w) f32."""
    N = len(images)
    C = int(images[0].shape[0])
    assert all(int(im.shape[0]) == C for im in images)
    H_in_max = max(int(im.shape[1]) for im in images)
    W_in_max = max(int(im.shape[2]) for im in images)

    store_dtype = compute_dtype        # image + factor operands stored in compute dtype
    esize = np.dtype(store_dtype).itemsize
    sub = max(8, 32 // esize)          # sublane alignment: 8 for f32, 16 for bf16

    # Output tile sizes: lane-dense TW (multiple of 128), sublane-aligned TH.
    if pad_h <= 256:
        TH = _round_up(pad_h, sub)
    else:
        TH = min((256, 192, 128), key=lambda t: (_round_up(pad_h, t), -t))
    H_out = _round_up(pad_h, TH)
    T_h = H_out // TH
    if pad_w <= 512:
        TW = _round_up(pad_w, 128)
    else:
        TW = min((512, 384, 256), key=lambda t: (_round_up(pad_w, t), -t))
    W_out = _round_up(pad_w, TW)
    T_w = W_out // TW

    # Band-limited tiling on BOTH axes: input range needed per (image, tile).
    h_lo = np.zeros((N, T_h), np.int64)
    h_hi = np.zeros((N, T_h), np.int64)
    w_lo = np.zeros((N, T_w), np.int64)
    w_hi = np.zeros((N, T_w), np.int64)
    for n, (im, (oh, ow)) in enumerate(zip(images, resized_sizes)):
        H_in, W_in = int(im.shape[1]), int(im.shape[2])
        for t in range(T_h):
            h_lo[n, t], h_hi[n, t] = _tap_span(H_in, oh, t * TH, TH)
        for t in range(T_w):
            w_lo[n, t], w_hi[n, t] = _tap_span(W_in, ow, t * TW, TW)

    BH = _fit_band_block(h_lo, h_hi, H_in_max, sub)     # sublane axis of image band
    BW = _fit_band_block(w_lo, w_hi, W_in_max, 128)     # lane axis of image band
    H_in_c = _round_up(H_in_max, BH)
    W_in_c = _round_up(W_in_max, BW)
    h_band_blk = (h_lo // BH).astype(np.int32)          # block index per (n, th)
    w_band_blk = (w_lo // BW).astype(np.int32)          # block index per (n, tw)

    # Zero-pad every image to one canonical input shape -> one compiled kernel
    # handles the whole variable-size batch (zero weight rows/cols keep the
    # padding inert).
    imgs_pad = jnp.stack([
        jnp.pad(jnp.asarray(im, dtype=jnp.float32),
                ((0, 0),
                 (0, H_in_c - int(im.shape[1])),
                 (0, W_in_c - int(im.shape[2]))))
        for im in images]).astype(store_dtype)           # (N, C, H_in_c, W_in_c)

    # Per-image, band-relative separable bilinear factors (small: banded both ways).
    wh_rel = np.zeros((N, T_h, TH, BH), np.float32)
    wwt_rel = np.zeros((N, T_w, BW, TW), np.float32)
    for n, (im, (oh, ow)) in enumerate(zip(images, resized_sizes)):
        H_in, W_in = int(im.shape[1]), int(im.shape[2])
        for t in range(T_h):
            wh_rel[n, t] = _bilinear_band(H_in, oh, TH, t * TH,
                                          int(h_band_blk[n, t]) * BH, BH)
        for t in range(T_w):
            wwt_rel[n, t] = _bilinear_band(W_in, ow, TW, t * TW,
                                           int(w_band_blk[n, t]) * BW, BW).T

    inv_std = (1.0 / np.asarray(std, np.float32)).astype(np.float32)
    mean_sc = (np.asarray(mean, np.float32) * inv_std).astype(np.float32)
    oh_arr = np.asarray([h for h, _ in resized_sizes], np.int32)
    ow_arr = np.asarray([w for _, w in resized_sizes], np.int32)

    # Pick the cheaper contraction order from static shapes (MXU MACs/channel):
    #   h_first: TH*BH*BW + TH*BW*TW   vs   w_first: BH*BW*TW + TH*BH*TW
    h_first = TH * BW * (BH + TW) <= BH * TW * (BW + TH)

    # Explicit VMEM budget: double-buffered blocks + headroom, capped below the
    # physical capacity of this generation (56 MiB on 64-MiB v7x, ~100 MiB on
    # 128-MiB v5e/v6e).
    img_blk = C * BH * BW * esize
    wh_blk = TH * BH * esize
    wwt_blk = BW * TW * esize
    out_blk = C * TH * TW * 4
    need = 2 * (img_blk + wh_blk + wwt_blk + out_blk) + (8 << 20)
    phys = _vmem_capacity_bytes()
    cap = min(100 << 20, phys - (8 << 20))
    vmem_limit = int(max(32 << 20, min(cap, need)))

    kernel = functools.partial(_norm_resize_pad_kernel,
                               h_first=h_first, compute_dtype=compute_dtype)

    out = pl.pallas_call(
        kernel,
        out_shape=jax.ShapeDtypeStruct((N, C, H_out, W_out), jnp.float32),
        grid_spec=pltpu.PrefetchScalarGridSpec(
            num_scalar_prefetch=2,                     # H / W band-start block indices
            grid=(N, T_h, T_w),
            in_specs=[
                pl.BlockSpec(memory_space=pltpu.MemorySpace.SMEM),  # oh (N,)
                pl.BlockSpec(memory_space=pltpu.MemorySpace.SMEM),  # ow (N,)
                pl.BlockSpec(memory_space=pltpu.MemorySpace.SMEM),  # mean*inv_std (C,)
                pl.BlockSpec(memory_space=pltpu.MemorySpace.SMEM),  # inv_std (C,)
                # image: only the (C, BH, BW) patch this output tile needs
                pl.BlockSpec((1, C, BH, BW),
                             lambda n, th, tw, hb, wb:
                             (n, 0, hb[n * T_h + th], wb[n * T_w + tw])),
                # band-relative Wh (changes only with n, th -> amortized over tw)
                pl.BlockSpec((1, 1, TH, BH), lambda n, th, tw, hb, wb: (n, th, 0, 0)),
                # band-relative WwT (changes only with n, tw)
                pl.BlockSpec((1, 1, BW, TW), lambda n, th, tw, hb, wb: (n, tw, 0, 0)),
                # NOTE: pipeline_mode=pl.Buffered(3) on the image band is a
                # further few-% tunable once the kernel is HBM-bound.
            ],
            out_specs=pl.BlockSpec((1, C, TH, TW),
                                   lambda n, th, tw, hb, wb: (n, 0, th, tw)),
        ),
        compiler_params=pltpu.CompilerParams(
            dimension_semantics=("parallel", "parallel", "parallel"),
            vmem_limit_bytes=vmem_limit),
    )(jnp.asarray(h_band_blk.reshape(-1)), jnp.asarray(w_band_blk.reshape(-1)),
      jnp.asarray(oh_arr), jnp.asarray(ow_arr),
      jnp.asarray(mean_sc), jnp.asarray(inv_std),
      imgs_pad,
      jnp.asarray(wh_rel, dtype=store_dtype),
      jnp.asarray(wwt_rel, dtype=store_dtype))

    # Slice internal lane/tile padding back to the module's (pad_h, pad_w).
    return out[:, :, :pad_h, :pad_w]


class TransformerJax:
    """JAX/Pallas port of the PyTorch `Transformer` module (inference image path)."""

    def __init__(self, min_size, max_size, image_mean, image_std,
                 size_divisible=32, fixed_size=None, compute_dtype=jnp.bfloat16):
        if not isinstance(min_size, (list, tuple)):
            min_size = (min_size,)
        self.min_size = min_size
        self.max_size = max_size
        self.image_mean = image_mean
        self.image_std = image_std
        self.size_divisible = size_divisible
        self.fixed_size = fixed_size
        # bf16 operands (f32 MXU accumulation) by default: ~2x MXU throughput on
        # v5e, more on v6e/v7x, and half the operand DMA bytes.  Pass
        # compute_dtype=jnp.float32 for bit-tight preprocessing.
        self.compute_dtype = compute_dtype
        self.training = False   # eval mode: size = min_size[-1]

    def _resized_hw(self, h, w):
        if self.fixed_size is not None:
            # interpolate(size=[fixed_size[1], fixed_size[0]]) -> (H, W)
            return int(self.fixed_size[1]), int(self.fixed_size[0])
        size = float(self.min_size[-1])
        min_s = np.float32(min(h, w))
        max_s = np.float32(max(h, w))
        scale = float(min(np.float32(size) / min_s,
                          np.float32(self.max_size) / max_s))
        # recompute_scale_factor=True -> output size = floor(input * scale)
        return int(math.floor(h * scale)), int(math.floor(w * scale))

    def forward(self, images, targets=None):
        # TODO(synk): target handling (boxes/masks) is not translated; this
        # implements the inference image path (targets=None).
        for img in images:
            if img.ndim != 3:
                raise ValueError("image is expected to be a 3d tensor [C, H, W]")

        resized_sizes = [self._resized_hw(int(img.shape[-2]), int(img.shape[-1]))
                         for img in images]

        # batched_image: max over per-image shapes, round H/W up to size_divisible.
        stride = float(self.size_divisible)
        pad_h = int(math.ceil(max(h for h, _ in resized_sizes) / stride) * stride)
        pad_w = int(math.ceil(max(w for _, w in resized_sizes) / stride) * stride)

        # TODO(synk): in a serving path, bucket incoming image shapes to a few
        # canonical sizes so this shape-specialized kernel is not recompiled per shape.
        batched_imgs = batched_normalize_resize_pad(
            images, resized_sizes, pad_h, pad_w,
            self.image_mean, self.image_std, compute_dtype=self.compute_dtype)

        image_size_list = [(int(h), int(w)) for h, w in resized_sizes]
        # ImageList equivalent: (tensors, image_sizes)
        return (batched_imgs, image_size_list), targets


def _reference(images, tf: TransformerJax):
    """Pure-JAX reference using full (un-banded) interpolation matrices."""
    mean = jnp.asarray(tf.image_mean, dtype=jnp.float32)
    std = jnp.asarray(tf.image_std, dtype=jnp.float32)
    resized = [tf._resized_hw(int(im.shape[-2]), int(im.shape[-1])) for im in images]
    stride = float(tf.size_divisible)
    pad_h = int(math.ceil(max(h for h, _ in resized) / stride) * stride)
    pad_w = int(math.ceil(max(w for _, w in resized) / stride) * stride)
    outs = []
    for im, (oh, ow) in zip(images, resized):
        _, H_in, W_in = im.shape
        wh = jnp.asarray(_bilinear_band(H_in, oh, pad_h, 0, 0, H_in))
        wwt = jnp.asarray(_bilinear_band(W_in, ow, pad_w, 0, 0, W_in).T)
        x = (im.astype(jnp.float32) - mean[:, None, None]) / std[:, None, None]
        outs.append(jnp.einsum('pi,cij,jq->cpq', wh, x, wwt))
    return jnp.stack(outs, axis=0)


if __name__ == "__main__":
    key = jax.random.PRNGKey(0)
    k1, k2 = jax.random.split(key)
    # two "images" with different sizes, values in [0, 1)
    img1 = jax.random.uniform(k1, (3, 32, 48), dtype=jnp.float32)
    img2 = jax.random.uniform(k2, (3, 30, 44), dtype=jnp.float32)
    images = [img1, img2]

    common = dict(min_size=24, max_size=40,
                  image_mean=[0.485, 0.456, 0.406],
                  image_std=[0.229, 0.224, 0.225],
                  size_divisible=32, fixed_size=None)

    # Exact path (f32 operands): tight tolerance vs. the pure-JAX reference.
    tf_f32 = TransformerJax(**common, compute_dtype=jnp.float32)
    (b32, image_sizes), _ = tf_f32.forward(images, targets=None)
    b32 = jax.block_until_ready(b32)
    ref = jax.block_until_ready(_reference(images, tf_f32))
    assert b32.shape == ref.shape, (b32.shape, ref.shape)
    np.testing.assert_allclose(np.asarray(b32), np.asarray(ref),
                               rtol=1e-5, atol=1e-5)

    # Default fast path (bf16 operands, f32 accumulation): bf16 rounds the
    # weights/pixels to ~2^-9 relative, so use a loose tolerance.
    tf_bf16 = TransformerJax(**common)
    (bbf, image_sizes_bf), _ = tf_bf16.forward(images, targets=None)
    bbf = jax.block_until_ready(bbf)
    assert bbf.shape == ref.shape, (bbf.shape, ref.shape)
    assert image_sizes_bf == image_sizes
    np.testing.assert_allclose(np.asarray(bbf), np.asarray(ref),
                               rtol=2e-2, atol=6e-2)

    print("KERNEL_OK")
</pallas_src>

<mosaic_0001>
module attributes {stable_mosaic.version = 11 : i64} {
  func.func @_norm_resize_pad_kernel(%arg0: i32, %arg1: i32, %arg2: i32, %arg3: memref<2xi32, #tpu.memory_space<smem>>, %arg4: memref<2xi32, #tpu.memory_space<smem>>, %arg5: memref<2xi32, #tpu.memory_space<smem>>, %arg6: memref<2xi32, #tpu.memory_space<smem>>, %arg7: memref<3xf32, #tpu.memory_space<smem>>, %arg8: memref<3xf32, #tpu.memory_space<smem>>, %arg9: memref<1x3x32x128xf32, #tpu.memory_space<vmem>>, %arg10: memref<1x1x32x32xf32, #tpu.memory_space<vmem>>, %arg11: memref<1x1x128x128xf32, #tpu.memory_space<vmem>>, %arg12: memref<1x3x32x128xf32, #tpu.memory_space<vmem>>) attributes {dimension_semantics = [#tpu.dimension_semantics<parallel>, #tpu.dimension_semantics<parallel>, #tpu.dimension_semantics<parallel>], iteration_bounds = array<i64: 2, 1, 1>, scalar_prefetch = 2 : i64, scratch_operands = 0 : i64, tpu.core_type = #tpu.core_type<tc>, window_params = [{transform_indices = @transform_0, window_bounds = array<i64: 2>}, {transform_indices = @transform_1, window_bounds = array<i64: 2>}, {transform_indices = @transform_2, window_bounds = array<i64: 3>}, {transform_indices = @transform_3, window_bounds = array<i64: 3>}, {transform_indices = @transform_4, window_bounds = array<i64: 1, 3, 32, 128>}, {transform_indices = @transform_5, window_bounds = array<i64: 1, 1, 32, 32>}, {transform_indices = @transform_6, window_bounds = array<i64: 1, 1, 128, 128>}, {transform_indices = @transform_7, window_bounds = array<i64: 1, 3, 32, 128>}]} {
    %c0 = arith.constant 0 : index
    %c0_0 = arith.constant 0 : index
    %c0_1 = arith.constant 0 : index
    %c0_2 = arith.constant 0 : index
    %0 = vector.load %arg10[%c0, %c0_0, %c0_1, %c0_2] : memref<1x1x32x32xf32, #tpu.memory_space<vmem>>, vector<1x1x32x32xf32>
    %1 = vector.shape_cast %0 : vector<1x1x32x32xf32> to vector<32x32xf32>
    %c0_3 = arith.constant 0 : index
    %c0_4 = arith.constant 0 : index
    %c0_5 = arith.constant 0 : index
    %c0_6 = arith.constant 0 : index
    %2 = vector.load %arg11[%c0_3, %c0_4, %c0_5, %c0_6] : memref<1x1x128x128xf32, #tpu.memory_space<vmem>>, vector<1x1x128x128xf32>
    %3 = vector.shape_cast %2 : vector<1x1x128x128xf32> to vector<128x128xf32>
    %4 = arith.index_cast %arg0 : i32 to index
    %5 = memref.load %arg5[%4] : memref<2xi32, #tpu.memory_space<smem>>
    %6 = arith.index_cast %arg0 : i32 to index
    %7 = memref.load %arg6[%6] : memref<2xi32, #tpu.memory_space<smem>>
    %8 = tpu.iota {dimensions = array<i32: 0>} : vector<32x128xi32>
    %c32_i32 = arith.constant 32 : i32
    %9 = arith.muli %arg1, %c32_i32 : i32
    %10 = vector.broadcast %9 : i32 to vector<32x128xi32>
    %11 = arith.addi %8, %10 : vector<32x128xi32>
    %12 = tpu.iota {dimensions = array<i32: 1>} : vector<32x128xi32>
    %c128_i32 = arith.constant 128 : i32
    %13 = arith.muli %arg2, %c128_i32 : i32
    %14 = vector.broadcast %13 : i32 to vector<32x128xi32>
    %15 = arith.addi %12, %14 : vector<32x128xi32>
    %16 = vector.broadcast %5 : i32 to vector<32x128xi32>
    %17 = arith.cmpi slt, %11, %16 : vector<32x128xi32>
    %18 = vector.broadcast %7 : i32 to vector<32x128xi32>
    %19 = arith.cmpi slt, %15, %18 : vector<32x128xi32>
    %20 = arith.andi %17, %19 : vector<32x128xi1>
    %cst = arith.constant 1.000000e+00 : f32
    %cst_7 = arith.constant 0.000000e+00 : f32
    %21 = vector.broadcast %cst : f32 to vector<32x128xf32>
    %22 = vector.broadcast %cst_7 : f32 to vector<32x128xf32>
    %23 = arith.select %20, %21, %22 : vector<32x128xi1>, vector<32x128xf32>
    %c0_8 = arith.constant 0 : index
    %c0_9 = arith.constant 0 : index
    %c0_10 = arith.constant 0 : index
    %c0_11 = arith.constant 0 : index
    %24 = vector.load %arg9[%c0_8, %c0_9, %c0_10, %c0_11] : memref<1x3x32x128xf32, #tpu.memory_space<vmem>>, vector<1x1x32x128xf32>
    %25 = vector.shape_cast %24 : vector<1x1x32x128xf32> to vector<32x128xf32>
    %cst_12 = arith.constant dense<0.000000e+00> : vector<32x128xf32>
    %26 = tpu.matmul %1, %25, %cst_12 {dimension_numbers = #tpu.dot_dimension_numbers<[1], [0], [0], [1], [0, 0, 1, 1], [], []>} : vector<32x32xf32>, vector<32x128xf32>, vector<32x128xf32> -> vector<32x128xf32>
    %cst_13 = arith.constant dense<0.000000e+00> : vector<32x128xf32>
    %27 = tpu.matmul %26, %3, %cst_13 {dimension_numbers = #tpu.dot_dimension_numbers<[1], [0], [0], [1], [0, 0, 1, 1], [], []>} : vector<32x128xf32>, vector<128x128xf32>, vector<32x128xf32> -> vector<32x128xf32>
    %c0_14 = arith.constant 0 : index
    %28 = memref.load %arg8[%c0_14] : memref<3xf32, #tpu.memory_space<smem>>
    %29 = vector.broadcast %28 : f32 to vector<32x128xf32>
    %30 = arith.mulf %27, %29 : vector<32x128xf32>
    %c0_15 = arith.constant 0 : index
    %31 = memref.load %arg7[%c0_15] : memref<3xf32, #tpu.memory_space<smem>>
    %32 = vector.broadcast %31 : f32 to vector<32x128xf32>
    %33 = arith.mulf %32, %23 : vector<32x128xf32>
    %34 = arith.subf %30, %33 : vector<32x128xf32>
    %c0_16 = arith.constant 0 : index
    %c0_17 = arith.constant 0 : index
    %c0_18 = arith.constant 0 : index
    %c0_19 = arith.constant 0 : index
    %35 = vector.load %arg12[%c0_16, %c0_17, %c0_18, %c0_19] : memref<1x3x32x128xf32, #tpu.memory_space<vmem>>, vector<1x1x32x128xf32>
    %36 = vector.shape_cast %35 : vector<1x1x32x128xf32> to vector<32x128xf32>
    %37 = vector.shape_cast %34 : vector<32x128xf32> to vector<1x1x32x128xf32>
    tpu.vector_store %arg12[%c0_16, %c0_17, %c0_18, %c0_19], %37 {strides = array<i32>} : memref<1x3x32x128xf32, #tpu.memory_space<vmem>>, vector<1x1x32x128xf32>,
    %c0_20 = arith.constant 0 : index
    %c1 = arith.constant 1 : index
    %c0_21 = arith.constant 0 : index
    %c0_22 = arith.constant 0 : index
    %38 = vector.load %arg9[%c0_20, %c1, %c0_21, %c0_22] : memref<1x3x32x128xf32, #tpu.memory_space<vmem>>, vector<1x1x32x128xf32>
    %39 = vector.shape_cast %38 : vector<1x1x32x128xf32> to vector<32x128xf32>
    %cst_23 = arith.constant dense<0.000000e+00> : vector<32x128xf32>
    %40 = tpu.matmul %1, %39, %cst_23 {dimension_numbers = #tpu.dot_dimension_numbers<[1], [0], [0], [1], [0, 0, 1, 1], [], []>} : vector<32x32xf32>, vector<32x128xf32>, vector<32x128xf32> -> vector<32x128xf32>
    %cst_24 = arith.constant dense<0.000000e+00> : vector<32x128xf32>
    %41 = tpu.matmul %40, %3, %cst_24 {dimension_numbers = #tpu.dot_dimension_numbers<[1], [0], [0], [1], [0, 0, 1, 1], [], []>} : vector<32x128xf32>, vector<128x128xf32>, vector<32x128xf32> -> vector<32x128xf32>
    %c1_25 = arith.constant 1 : index
    %42 = memref.load %arg8[%c1_25] : memref<3xf32, #tpu.memory_space<smem>>
    %43 = vector.broadcast %42 : f32 to vector<32x128xf32>
    %44 = arith.mulf %41, %43 : vector<32x128xf32>
    %c1_26 = arith.constant 1 : index
    %45 = memref.load %arg7[%c1_26] : memref<3xf32, #tpu.memory_space<smem>>
    %46 = vector.broadcast %45 : f32 to vector<32x128xf32>
    %47 = arith.mulf %46, %23 : vector<32x128xf32>
    %48 = arith.subf %44, %47 : vector<32x128xf32>
    %c0_27 = arith.constant 0 : index
    %c1_28 = arith.constant 1 : index
    %c0_29 = arith.constant 0 : index
    %c0_30 = arith.constant 0 : index
    %49 = vector.load %arg12[%c0_27, %c1_28, %c0_29, %c0_30] : memref<1x3x32x128xf32, #tpu.memory_space<vmem>>, vector<1x1x32x128xf32>
    %50 = vector.shape_cast %49 : vector<1x1x32x128xf32> to vector<32x128xf32>
    %51 = vector.shape_cast %48 : vector<32x128xf32> to vector<1x1x32x128xf32>
    tpu.vector_store %arg12[%c0_27, %c1_28, %c0_29, %c0_30], %51 {strides = array<i32>} : memref<1x3x32x128xf32, #tpu.memory_space<vmem>>, vector<1x1x32x128xf32>,
    %c0_31 = arith.constant 0 : index
    %c2 = arith.constant 2 : index
    %c0_32 = arith.constant 0 : index
    %c0_33 = arith.constant 0 : index
    %52 = vector.load %arg9[%c0_31, %c2, %c0_32, %c0_33] : memref<1x3x32x128xf32, #tpu.memory_space<vmem>>, vector<1x1x32x128xf32>
    %53 = vector.shape_cast %52 : vector<1x1x32x128xf32> to vector<32x128xf32>
    %cst_34 = arith.constant dense<0.000000e+00> : vector<32x128xf32>
    %54 = tpu.matmul %1, %53, %cst_34 {dimension_numbers = #tpu.dot_dimension_numbers<[1], [0], [0], [1], [0, 0, 1, 1], [], []>} : vector<32x32xf32>, vector<32x128xf32>, vector<32x128xf32> -> vector<32x128xf32>
    %cst_35 = arith.constant dense<0.000000e+00> : vector<32x128xf32>
    %55 = tpu.matmul %54, %3, %cst_35 {dimension_numbers = #tpu.dot_dimension_numbers<[1], [0], [0], [1], [0, 0, 1, 1], [], []>} : vector<32x128xf32>, vector<128x128xf32>, vector<32x128xf32> -> vector<32x128xf32>
    %c2_36 = arith.constant 2 : index
    %56 = memref.load %arg8[%c2_36] : memref<3xf32, #tpu.memory_space<smem>>
    %57 = vector.broadcast %56 : f32 to vector<32x128xf32>
    %58 = arith.mulf %55, %57 : vector<32x128xf32>
    %c2_37 = arith.constant 2 : index
    %59 = memref.load %arg7[%c2_37] : memref<3xf32, #tpu.memory_space<smem>>
    %60 = vector.broadcast %59 : f32 to vector<32x128xf32>
    %61 = arith.mulf %60, %23 : vector<32x128xf32>
    %62 = arith.subf %58, %61 : vector<32x128xf32>
    %c0_38 = arith.constant 0 : index
    %c2_39 = arith.constant 2 : index
    %c0_40 = arith.constant 0 : index
    %c0_41 = arith.constant 0 : index
    %63 = vector.load %arg12[%c0_38, %c2_39, %c0_40, %c0_41] : memref<1x3x32x128xf32, #tpu.memory_space<vmem>>, vector<1x1x32x128xf32>
    %64 = vector.shape_cast %63 : vector<1x1x32x128xf32> to vector<32x128xf32>
    %65 = vector.shape_cast %62 : vector<32x128xf32> to vector<1x1x32x128xf32>
    tpu.vector_store %arg12[%c0_38, %c2_39, %c0_40, %c0_41], %65 {strides = array<i32>} : memref<1x3x32x128xf32, #tpu.memory_space<vmem>>, vector<1x1x32x128xf32>,
    return
  }
  func.func @transform_0(%arg0: i32, %arg1: i32, %arg2: i32, %arg3: memref<2xi32, #tpu.memory_space<smem>>, %arg4: memref<2xi32, #tpu.memory_space<smem>>) -> i32 {
    %c0_i32 = arith.constant 0 : i32
    %c0_i32_0 = arith.constant 0 : i32
    return %c0_i32 : i32
  }
  func.func @transform_1(%arg0: i32, %arg1: i32, %arg2: i32, %arg3: memref<2xi32, #tpu.memory_space<smem>>, %arg4: memref<2xi32, #tpu.memory_space<smem>>) -> i32 {
    %c0_i32 = arith.constant 0 : i32
    %c0_i32_0 = arith.constant 0 : i32
    return %c0_i32 : i32
  }
  func.func @transform_2(%arg0: i32, %arg1: i32, %arg2: i32, %arg3: memref<2xi32, #tpu.memory_space<smem>>, %arg4: memref<2xi32, #tpu.memory_space<smem>>) -> i32 {
    %c0_i32 = arith.constant 0 : i32
    %c0_i32_0 = arith.constant 0 : i32
    return %c0_i32 : i32
  }
  func.func @transform_3(%arg0: i32, %arg1: i32, %arg2: i32, %arg3: memref<2xi32, #tpu.memory_space<smem>>, %arg4: memref<2xi32, #tpu.memory_space<smem>>) -> i32 {
    %c0_i32 = arith.constant 0 : i32
    %c0_i32_0 = arith.constant 0 : i32
    return %c0_i32 : i32
  }
  func.func @transform_4(%arg0: i32, %arg1: i32, %arg2: i32, %arg3: memref<2xi32, #tpu.memory_space<smem>>, %arg4: memref<2xi32, #tpu.memory_space<smem>>) -> (i32, i32, i32, i32) {
    %c1_i32 = arith.constant 1 : i32
    %0 = arith.muli %arg0, %c1_i32 : i32
    %1 = arith.addi %0, %arg1 : i32
    %2 = arith.index_cast %1 : i32 to index
    %3 = memref.load %arg3[%2] : memref<2xi32, #tpu.memory_space<smem>>
    %c1_i32_0 = arith.constant 1 : i32
    %4 = arith.muli %arg0, %c1_i32_0 : i32
    %5 = arith.addi %4, %arg2 : i32
    %6 = arith.index_cast %5 : i32 to index
    %7 = memref.load %arg4[%6] : memref<2xi32, #tpu.memory_space<smem>>
    %c0_i32 = arith.constant 0 : i32
    %c0_i32_1 = arith.constant 0 : i32
    return %arg0, %c0_i32, %3, %7 : i32, i32, i32, i32
  }
  func.func @transform_5(%arg0: i32, %arg1: i32, %arg2: i32, %arg3: memref<2xi32, #tpu.memory_space<smem>>, %arg4: memref<2xi32, #tpu.memory_space<smem>>) -> (i32, i32, i32, i32) {
    %c0_i32 = arith.constant 0 : i32
    %c0_i32_0 = arith.constant 0 : i32
    %c0_i32_1 = arith.constant 0 : i32
    return %arg0, %arg1, %c0_i32, %c0_i32_0 : i32, i32, i32, i32
  }
  func.func @transform_6(%arg0: i32, %arg1: i32, %arg2: i32, %arg3: memref<2xi32, #tpu.memory_space<smem>>, %arg4: memref<2xi32, #tpu.memory_space<smem>>) -> (i32, i32, i32, i32) {
    %c0_i32 = arith.constant 0 : i32
    %c0_i32_0 = arith.constant 0 : i32
    %c0_i32_1 = arith.constant 0 : i32
    return %arg0, %arg2, %c0_i32, %c0_i32_0 : i32, i32, i32, i32
  }
  func.func @transform_7(%arg0: i32, %arg1: i32, %arg2: i32, %arg3: memref<2xi32, #tpu.memory_space<smem>>, %arg4: memref<2xi32, #tpu.memory_space<smem>>) -> (i32, i32, i32, i32) {
    %c0_i32 = arith.constant 0 : i32
    %c0_i32_0 = arith.constant 0 : i32
    return %arg0, %c0_i32, %arg1, %arg2 : i32, i32, i32, i32
  }
}

</mosaic_0001>

<bundles_post_ra>
// kernel: tpu_custom_call.1
= control target key start
LH: loop header
LB: loop body
LE: loop exit
PB: predicated region body
PF: predicated region fallthrough
CT: control target
= control target key end

     0   :  { %s2879_s0 = inlined_call_operand.hbm [shape: s32[2], index: 0, kind: input, shape index: {}]   ;;  %s2880_s2 = inlined_call_operand.vmem [shape: s32[2], index: 2, kind: input, shape index: {}]   ;;  %s2881_s3 = inlined_call_operand.vmem [shape: s32[2], index: 3, kind: input, shape index: {}]   ;;  %s2882_s4 = inlined_call_operand.vmem [shape: f32[3], index: 4, kind: input, shape index: {}]   ;;  %s2883_s5 = inlined_call_operand.vmem [shape: f32[3], index: 5, kind: input, shape index: {}]   ;;  %s2884_s6 = inlined_call_operand.hbm [shape: f32[2,3,32,128], index: 6, kind: input, shape index: {}]   ;;  %s2885_s7 = inlined_call_operand.hbm [shape: f32[2,1,32,32], index: 7, kind: input, shape index: {}]   ;;  %s2886_s8 = inlined_call_operand.hbm [shape: f32[2,1,128,128], index: 8, kind: input, shape index: {}]   ;;  %s2887_s9 = inlined_call_operand.hbm [shape: f32[2,3,32,128], index: 9, kind: output, shape index: {}]   ;;  %s2888_s1 = inlined_call_operand.vmem [shape: s32[2], index: 1, kind: input, shape index: {}]  }
   0x1   :  { %2915 = sst [smem:[#allocation38_spill]] %s2880_s2  ;;  %s1920_s11 = scalar_lea.hbm %s2879_s0, 16 }
   0x2   :  { %2916 = sst [smem:[#allocation39_spill]] %s2881_s3  ;;  %p1921_p0 = scmp.ne.s32.totalorder %s2879_s0, %s1920_s11 }
   0x3   :  { %2917 = sst [smem:[#allocation40_spill]] %s2882_s4  ;;  %p1924_p1 = scmp.lt.u32.totalorder %s1920_s11, %s2879_s0 }
   0x4   :  { %2918 = sst [smem:[#allocation41_spill]] %s2883_s5 }
   0x5   :  { %2919 = sst [smem:[#allocation42_spill]] %s2885_s7  ;;  %p1926_p2 = pnand %p1924_p1, %p1921_p0 }
   0x6   :  { %2920 = sst [smem:[#allocation43_spill]] %s2887_s9 }
   0x7   :  { %1929 = shalt.err (!%p1926_p2)  }
   0x8   :  { %s2218_s16 = smov [#allocation3]   ;;  %s16_s21 = sshll.u32 %s2888_s1, 4  ;;  %s17_s21 = int_to_ptr.vmem [resolvable:$true] %s16_s21 }
   0x9   :  { %15 = dma.hbm_to_smem %s2879_s0, 16, %s2218_s16, [#allocation2] }
   0xa   :  { %s1930_s22 = scalar_lea.vmem %s17_s21, 16  ;;  %p1935_p4 = scmp.lt.s32.totalorder %s17_s21, %s17_s21 }
   0xb   :  { %p1931_p3 = scmp.ne.s32.totalorder %s17_s21, %s1930_s22  ;;  %p1936_p5 = scmp.lt.s32.totalorder %s1930_s22, %s1930_s22 }
   0xd   :  { %p1937_p6 = por %p1936_p5, %p1935_p4 }
   0xf   :  { %p1938_p7 = pnand %p1937_p6, %p1931_p3 }
  0x11   :  { %1941 = shalt.err (!%p1938_p7)  }
  0x12   :  { %s2219_s23 = smov [#allocation4]  }
  0x13   :  { %19 = dma.vmem_to_smem %s17_s21, 16, %s2219_s23, [#allocation2] }
  0x14   :  { %2156 = dma.done.wait [#allocation2], 32 }
  0x15   :  { %2157 = vsyncadd [#allocation2], 4294967264 }
  0x16   :  { %21 = sfence }
  0x17   :  { %22 = vsyncpa [#allocation8], 0 }
  0x18   :  { %23 = vsyncpa [#allocation10], 0 }
  0x19   :  { %24 = vsyncpa [#allocation13], 0 }
  0x1a   :  { %25 = vsyncpa [#allocation6], 0 }
  0x1b   :  { %27 = vsyncpa [#allocation6 + $0x1], 0 }
  0x1c   :  { %28 = vsyncpa [#allocation16], 0 }
  0x1d   :  { %30 = vsyncpa [#allocation16 + $0x1], 0 }
  0x1e   :  { %31 = vsyncpa [#allocation7], 0 }
  0x1f   :  { %33 = vsyncpa [#allocation7 + $0x1], 0  ;;  %s2298_s0 = smov 0   ;;  %s2300_s1 = smov 0  }
  0x20   :  { %s2302_s24 = smov 0   ;;  %s2304_s25 = smov 0  }
  0x21   :  { %s2306_s26 = smov 0   ;;  %s2308_s27 = smov 0  }
  0x22   :  { %s2310_s28 = smov 0   ;;  %s2312_s29 = smov 0  }
  0x23   :  { %s2314_s30 = smov 0  }
  0x24 LB: > { %2921 = sst [smem:[#allocation30_spill]] %s2184_s0  ;;  %s2347_s13 = sadd.s32 4294967295, %s2216_s30   ;;  %s2216_s30 = sphi %s2314_s30, %s39_s30   ;;  %s2212_s29 = sphi %s2312_s29, %s2988_s29   ;;  %s2208_s28 = sphi %s2310_s28, %s2987_s28   ;;  %s2204_s27 = sphi %s2308_s27, %s2986_s27   ;;  %s2200_s26 = sphi %s2306_s26, %s2985_s26   ;;  %s2196_s25 = sphi %s2304_s25, %s2984_s25   ;;  %s2192_s24 = sphi %s2302_s24, %s2980_s24   ;;  %s2188_s1 = sphi %s2300_s1, %s2983_s1   ;;  %s2184_s0 = sphi %s2298_s0, %s2982_s0  }
  0x25   : > { %2922 = sst [smem:[#allocation31_spill]] %s2192_s24  ;;  %s2924_s3 = sld [smem:[#allocation39_spill]] }
  0x26   : > { %2923 = sst [smem:[#allocation32_spill]] %s2208_s28  ;;  %p1345_p8 = scmp.ge.s32.totalorder %s2216_s30, 1 }
  0x27   : > { %p2897_p9 = scmp.eq.s32.totalorder %s2347_s13, 0  ;;  %p258_p10 = scmp.eq.s32.totalorder %s2347_s13, 1 }
  0x28   : > { %p271_p11 = scmp.lt.s32.totalorder %s2216_s30, 3  ;;  %s1344_s16 = sadd.s32 4294967294, %s2216_s30  }
  0x29   : > { %s58_s17 = sadd.s32 1, %s2212_s29 }
  0x2a   : > { %p2354_p13 = pnand %p1345_p8, %p271_p11 }
  0x2b   : > { %s295_s12 = sshll.u32 %s2924_s3, 4  ;;  %s296_s12 = int_to_ptr.vmem [resolvable:$true] %s295_s12 }
  0x2c   : > { %s2925_s14 = scalar_select %p2354_p13, 1, 0 }
  0x2d   : > { %p1796_p0 = pneg %p2354_p13  ;;  %s1942_s18 = scalar_lea.vmem %s296_s12, 16 }
  0x2e   : > { %p1943_p2 = scmp.ne.s32.totalorder %s296_s12, %s1942_s18  ;;  %p1950_p6 = scmp.lt.s32.totalorder %s296_s12, %s296_s12 }
  0x2f   : > { %p2362_p1 = pnand %p1796_p0, %p2897_p9  ;;  %p1951_p7 = scmp.lt.s32.totalorder %s1942_s18, %s1942_s18 }
  0x31   : > { %p2898_p3 = pneg %p2362_p1  ;;  %p1952_p8 = por %p1951_p7, %p1950_p6 }
  0x33   : > { %p1945_p4 = pnand %p2898_p3, %p1943_p2 }
  0x35   : > { %p1946_p5 = pneg %p1945_p4 }
  0x37   : > { %p1953_p11 = pnand %p1952_p8, %p1946_p5 }
  0x39   : > { %1956 = shalt.err (!%p1953_p11)
}
  0x3a   : > { %s2220_s19 = smov [#allocation9]   ;;  %p60_p0 = scmp.ge.s32.totalorder %s58_s17, 2 }
  0x3b   : > { %1802 = dma.vmem_to_smem (!%p2362_p1), %s296_s12, 16, %s2220_s19, [#allocation10]  }
  0x3c   : > { %p2889_p2 = scmp.eq.s32.totalorder %s2216_s30, 0  ;;  %s189_s20 = sadd.s32 1, %s2192_s24 }
  0x3d   : > { %p196_p4 = scmp.ne.s32.totalorder %s2192_s24, %s2188_s1  ;;  %s2990_s17 = smov (%p60_p0, %s58_s17), 0 }
  0x3e   : > { %2927 = sst [smem:[#allocation33_spill]] %s2990_s17  ;;  %p202_p6 = scmp.ne.s32.totalorder %s2188_s1, %s2184_s0 }
  0x3f   : > { %p2383_p5 = por %p196_p4, %p2889_p2  ;;  %s2391_s22 = ssub.s32 %s2212_s29, %s2990_s17 }
  0x40   : > { %p2395_p7 = por %p258_p10, %p196_p4  ;;  %p187_p8 = scmp.eq.s32.totalorder %s2391_s22, 0 }
  0x41   : > { %p2402_p11 = por %p202_p6, %p2897_p9  ;;  %p264_p0 = scmp.eq.s32.totalorder %s1344_s16, 1 }
  0x42   : > { %s2929_s23 = scalar_select %p2395_p7, 1, 0 }
  0x43   : > { %s2931_s10 = scalar_select %p2402_p11, 1, 0 }
  0x44   : > { %2930 = sst [smem:[#allocation34_spill]] %s2929_s23  ;;  %p2896_p12 = scmp.lt.s32.totalorder %s2216_s30, 2 }
  0x45   : > { %2932 = sst [smem:[#allocation35_spill]] %s2931_s10  ;;  %p2410_p2 = por %p264_p0, %p202_p6 }
  0x46   : > { %s2408_s11 = scalar_select %p187_p8, %s2192_s24, %s189_s20  }
  0x47   : > { %s2934_s12 = scalar_select %p2410_p2, 1, 0 }
  0x48   : > { %2933 = sst [smem:[#allocation36_spill]] %s2408_s11  ;;  %s356_s18 = sand.u32 1, %s2216_s30  }
  0x49   : > { %2935 = sst [smem:[#allocation37_spill]] %s2934_s12  ;;  %s2895_s19 = sand.u32 1, %s2192_s24  }
  0x4a   : > { %s1353_s3 = sshll.u32 %s2895_s19, 5  ;;  %s1401_s0 = sshll.u32 %s2212_s29, 9 }
  0x4b   : > { %s2936_s7 = sld [smem:[#allocation42_spill]]  ;;  %s360_s16 = scalar_lea.vmem [#allocation15], %s1353_s3 }
  0x4c   : > { %s369_s20 = sshll.u32 %s360_s16, 4  ;;  %p2428_p10 = pnand %p2896_p12, %p2383_p5  ;;  %s2432_s20 = int_to_ptr.vmem [resolvable:$true] %s369_s20 }
  0x4d   : > { %s2434_s19 = scalar_lea.sflag [#allocation16], %s356_s18 }
  0x4e   : > { %s2937_s11 = scalar_select %p2428_p10, 1, 0 }
  0x4f   : > { %p2906_p6 = pneg %p2428_p10 }
  0x51   : > { %s2422_s28 = scalar_lea.hbm %s2936_s7, %s1401_s0  ;;  %s1962_s21 = scalar_lea.hbm %s2936_s7, 1024 }
  0x52   : > { %s1957_s9 = scalar_lea.hbm %s2422_s28, 512  ;;  %p1963_p5 = scmp.lt.u32.totalorder %s2422_s28, %s2936_s7 }
  0x53   : > { %p1958_p4 = scmp.ne.s32.totalorder %s2422_s28, %s1957_s9  ;;  %p1964_p12 = scmp.lt.u32.totalorder %s1962_s21, %s1957_s9 }
  0x54   : > { %p1966_p3 = scmp.lt.u32.totalorder %s1957_s9, %s2422_s28 }
  0x55   : > { %p1960_p8 = pnand %p2906_p6, %p1958_p4  ;;  %p1965_p9 = por %p1964_p12, %p1963_p5 }
  0x57   : > { %p1961_p0 = pneg %p1960_p8  ;;  %p1967_p2 = por %p1966_p3, %p1965_p9 }
  0x59   : > { %p1968_p7 = pnand %p1967_p2, %p1961_p0 }
  0x5b   : > { %1971 = shalt.err (!%p1968_p7)
}
  0x5c   : > { %s1972_s18 = scalar_lea.vmem %s2432_s20, 512  ;;  %s2221_s3 = smov [#allocation15]  }
  0x5d   : > { %p1973_p4 = scmp.ne.s32.totalorder %s2432_s20, %s1972_s18  ;;  %s1977_s0 = sshll.u32 %s2221_s3, 4  ;;  %s1978_s0 = int_to_ptr.vmem [resolvable:$false] %s1977_s0 }
  0x5e   : > { %s1979_s23 = scalar_lea.vmem %s1978_s0, 1024  ;;  %p1980_p13 = scmp.lt.s32.totalorder %s2432_s20, %s1978_s0 }
  0x5f   : > { %p1975_p8 = pnand %p1973_p4, %p2906_p6  ;;  %p1981_p12 = scmp.lt.s32.totalorder %s1979_s23, %s1972_s18 }
  0x61   : > { %p1976_p11 = pneg %p1975_p8  ;;  %p1982_p5 = por %p1981_p12, %p1980_p13 }
  0x63   : > { %p1983_p9 = pnand %p1982_p5, %p1976_p11 }
  0x65   : > { %1986 = shalt.err (!%p1983_p9)
}
  0x66   : > { %s2902_s9 = smov 128   ;;  %s2904_s21 = smov 8  }
  0x67   : > { %1819 = dma.hbm_to_vmem [thread:$0]  (!%p2428_p10), %s2422_s28, 512, %s2432_s20, %s2434_s19, %s2902_s9, %s2902_s9, %s2904_s21  }
  0x68   : > { %s2938_s16 = sand.u32 1, %s2192_s24   ;;  %s2939_s2 = sld [smem:[#allocation38_spill]] }
  0x69   : > { %s2467_s3 = sshll.u32 %s2938_s16, 7  ;;  %p2940_p3 = pneg %p2362_p1 }
  0x6e   : > { %s284_s23 = sshll.u32 %s2939_s2, 4  ;;  %s285_s23 = int_to_ptr.vmem [resolvable:$true] %s284_s23 }
  0x6f   : > { %s1987_s7 = scalar_lea.vmem %s285_s23, 16  ;;  %p1995_p11 = scmp.lt.s32.totalorder %s285_s23, %s285_s23 }
  0x70   : > { %p1988_p13 = scmp.ne.s32.totalorder %s285_s23, %s1987_s7  ;;  %p1996_p0 = scmp.lt.s32.totalorder %s1987_s7, %s1987_s7 }
  0x72   : > { %p1990_p2 = pnand %p1988_p13, %p2940_p3  ;;  %p1997_p4 = por %p1996_p0, %p1995_p11 }
  0x74   : > { %p1991_p7 = pneg %p1990_p2 }
  0x76   : > { %p1998_p8 = pnand %p1997_p4, %p1991_p7 }
  0x78   : > { %2001 = shalt.err (!%p1998_p8)
}
  0x79   : > { %s2224_s28 = smov [#allocation5]   ;;  %s2941_s4 = sld [smem:[#allocation40_spill]] }
  0x7a   : > { %1799 = dma.vmem_to_smem (!%p2362_p1), %s285_s23, 16, %s2224_s28, [#allocation8]  }
  0x7b   : > { %s2942_s5 = sld [smem:[#allocation41_spill]]  ;;  %p2943_p5 = pmov %p2940_p3 }
  0x7f   : > { %s306_s18 = sshll.u32 %s2941_s4, 4  ;;  %s307_s18 = int_to_ptr.vmem [resolvable:$true] %s306_s18 }
  0x80   : > { %s2002_s2 = scalar_lea.vmem %s307_s18, 16  ;;  %p2010_p3 = scmp.lt.s32.totalorder %s307_s18, %s307_s18 }
  0x81   : > { %s317_s21 = sshll.u32 %s2942_s5, 4  ;;  %p2003_p12 = scmp.ne.s32.totalorder %s307_s18, %s2002_s2  ;;  %s318_s21 = int_to_ptr.vmem [resolvable:$true] %s317_s21 }
  0x82   : > { %p2011_p2 = scmp.lt.s32.totalorder %s2002_s2, %s2002_s2 }
  0x83   : > { %p2005_p9 = pnand %p2003_p12, %p2943_p5 }
  0x84   : > { %p2012_p7 = por %p2011_p2, %p2010_p3 }
  0x85   : > { %p2006_p13 = pneg %p2005_p9 }
  0x87   : > { %p2013_p11 = pnand %p2012_p7, %p2006_p13 }
  0x89   : > { %2016 = shalt.err (!%p2013_p11)
}
  0x8a   : > { %s2225_s7 = smov [#allocation11]   ;;  %s2017_s23 = scalar_lea.vmem %s318_s21, 16 }
  0x8b   : > { %1805 = dma.vmem_to_smem (!%p2362_p1), %s307_s18, 16, %s2225_s7, [#allocation10]  }
  0x8c   : > { %p2018_p0 = scmp.ne.s32.totalorder %s318_s21, %s2017_s23  ;;  %p2944_p4 = pmov %p2943_p5 }
  0x8d   : > { %p2025_p10 = scmp.lt.s32.totalorder %s318_s21, %s318_s21  ;;  %p2026_p12 = scmp.lt.s32.totalorder %s2017_s23, %s2017_s23 }
  0x8e   : > { %p2020_p8 = pnand %p2018_p0, %p2944_p4 }
  0x8f   : > { %p2027_p5 = por %p2026_p12, %p2025_p10 }
  0x90   : > { %p2021_p6 = pneg %p2020_p8 }
  0x92   : > { %p2028_p9 = pnand %p2027_p5, %p2021_p6 }
  0x94   : > { %2031 = shalt.err (!%p2028_p9)
}
  0x95   : > { %s2226_s2 = smov [#allocation12]   ;;  %s147_s9 = sld [smem:[#allocation3 + %s2212_s29]] }
  0x96   : > { %1808 = dma.vmem_to_smem (!%p2362_p1), %s318_s21, 16, %s2226_s2, [#allocation13]  }
  0x97   : > { %s149_s28 = sld [smem:[#allocation4 + %s2212_s29]]  ;;  %p168_p10 = scmp.ne.s32.totalorder %s2204_s27, %s2200_s26 }
  0x98   : > { %s151_s20 = sld [smem:[#allocation3 + %s2990_s17]]  ;;  %p174_p6 = scmp.ne.s32.totalorder %s2200_s26, %s2196_s25 }
  0x99   : > { %s153_s15 = sld [smem:[#allocation4 + %s2990_s17]]  ;;  %p2945_p13 = scmp.eq.s32.totalorder %s2216_s30, 0 }
  0x9a   : > { %p2947_p2 = scmp.eq.s32.totalorder %s2347_s13, 0  ;;  %s328_s18 = sand.u32 1, %s2204_s27  }
  0x9b   : > { %p2503_p3 = por %p2945_p13, %p168_p10  ;;  %s383_s23 = scalar_lea.vmem [#allocation17], %s2467_s3 }
  0x9c   : > { %p2509_p1 = por %p2947_p2, %p174_p6  ;;  %s392_s2 = sshll.u32 %s383_s23, 4  ;;  %s2555_s2 = int_to_ptr.vmem [resolvable:$true] %s392_s2 }
  0x9d   : > { %s1776_s0 = scalar_select %p2503_p3, [#allocation3], [#allocation19] }
  0x9e   : > { %s2948_s21 = scalar_select %p2509_p1, 1, 0 }
  0x9f   : > { %s155_s25 = ssub.s32 %s147_s9, %s151_s20  ;;  %s157_s7 = ssub.s32 %s149_s28, %s153_s15 }
  0xa0   : > { %s156_s4 = sor.u32 %s155_s25, %s2391_s22  ;;  %s161_s17 = sadd.s32 1, %s2204_s27 }
  0xa1   : > { %s158_s5 = sor.u32 %s157_s7, %s156_s4  ;;  %s2521_s24 = smul.u32 96, %s328_s18 }
  0xa2   : > { %p159_p7 = scmp.eq.s32.totalorder %s158_s5, 0  ;;  %p2949_p11 = scmp.lt.s32.totalorder %s2216_s30, 2 }
  0xa3   : > { %s1777_s12 = scalar_select %p2503_p3, %s2212_s29, 0 }
  0xa4   : > { %s2527_s10 = scalar_select %p159_p7, %s2204_s27, %s161_s17  }
  0xa5   : > { %s2992_s0 = smov (!%p2949_p11, %s1776_s0), [#allocation21]  ;;  %p2950_p0 = pmov %p2949_p11 }
  0xa6   : > { %s1778_s9 = scalar_select %p2503_p3, [#allocation4], [#allocation20] }
  0xa7   : > { %s2994_s12 = smov (!%p2950_p0, %s1777_s12), 0  ;;  %p2951_p4 = pmov %p2950_p0 }
  0xa8   : > { %s2535_s3 = sld [smem:[%s2992_s0 + %s2994_s12]]  ;;  %p2952_p8 = pmov %p2950_p0 }
  0xa9   : > { %s2996_s9 = smov (!%p2951_p4, %s1778_s9), [#allocation22]  ;;  %s1402_s5 = sshll.u32 %s2212_s29, 11 }
  0xaa   : > { %p2543_p12 = pnand %p2952_p8, %p2503_p3  ;;  %s2548_s22 = sld [smem:[%s2996_s9 + %s2994_s12]] }
  0xab   : > { %s2553_s20 = scalar_lea.hbm %s2886_s8, %s1402_s5  ;;  %p2954_p9 = scmp.ne.s32.totalorder %s2937_s11, 0 }
  0xac   : > { %s2032_s15 = scalar_lea.hbm %s2553_s20, 2048  ;;  %s2037_s0 = scalar_lea.hbm %s2886_s8, 4096 }
  0xad   : > { %p2033_p5 = scmp.ne.s32.totalorder %s2553_s20, %s2032_s15  ;;  %p2955_p10 = pneg %p2954_p9 }
  0xae   : > { %p2038_p3 = scmp.lt.u32.totalorder %s2553_s20, %s2886_s8  ;;  %p2039_p2 = scmp.lt.u32.totalorder %s2037_s0, %s2032_s15 }
  0xaf   : > { %p2035_p6 = pnand %p2033_p5, %p2955_p10  ;;  %p2041_p11 = scmp.lt.u32.totalorder %s2032_s15, %s2553_s20 }
  0xb0   : > { %p2040_p7 = por %p2039_p2, %p2038_p3 }
  0xb1   : > { %p2036_p13 = pneg %p2035_p6 }
  0xb2   : > { %p2042_p0 = por %p2041_p11, %p2040_p7 }
  0xb4   : > { %p2043_p4 = pnand %p2042_p0, %p2036_p13 }
  0xb6   : > { %2046 = shalt.err (!%p2043_p4)
}
  0xb7   : > { %s2047_s23 = scalar_lea.vmem %s2555_s2, 2048  ;;  %p2956_p5 = pmov %p2955_p10 }
  0xb8   : > { %p2048_p8 = scmp.ne.s32.totalorder %s2555_s2, %s2047_s23  ;;  %s2227_s9 = smov [#allocation17]  }
  0xb9   : > { %s2052_s5 = sshll.u32 %s2227_s9, 4  ;;  %s2053_s5 = int_to_ptr.vmem [resolvable:$false] %s2052_s5 }
  0xba   : > { %p2050_p10 = pnand %p2048_p8, %p2956_p5  ;;  %s2054_s17 = scalar_lea.vmem %s2053_s5, 4096 }
  0xbb   : > { %p2055_p1 = scmp.lt.s32.totalorder %s2555_s2, %s2053_s5  ;;  %p2056_p3 = scmp.lt.s32.totalorder %s2054_s17, %s2047_s23 }
  0xbc   : > { %p2051_p6 = pneg %p2050_p10 }
  0xbd   : > { %p2057_p2 = por %p2056_p3, %p2055_p1 }
  0xbf   : > { %p2058_p7 = pnand %p2057_p2, %p2051_p6 }
  0xc1   : > { %2061 = shalt.err (!%p2058_p7)
}
  0xc2   : > { %s2957_s28 = smov 8   ;;  %s2958_s15 = smov 128  }
  0xc3   : > { %1822 = dma.hbm_to_vmem [thread:$0]  (!%p2954_p9), %s2553_s20, 2048, %s2555_s2, %s2434_s19, %s2958_s15, %s2958_s15, %s2957_s28  }
  0xc4   : > { %s1351_s16 = sshll.u32 %s2535_s3, 2  ;;  %s1764_s12 = smul.u32 12, %s2212_s29 }
  0xc5   : > { %s332_s0 = scalar_lea.vmem [#allocation14], %s2521_s24  ;;  %s341_s7 = sadd.s32 %s1351_s16, %s2548_s22 }
  0xc6   : > { %s346_s25 = sshll.u32 %s332_s0, 4  ;;  %s343_s11 = sadd.s32 %s1764_s12, %s341_s7  ;;  %s2588_s25 = int_to_ptr.vmem [resolvable:$true] %s346_s25 }
  0xc7   : > { %s1352_s23 = sshll.u32 %s343_s11, 7  ;;  %s2597_s19 = scalar_lea.sflag [#allocation6], %s328_s18 }
  0xc8   : > { %s2593_s17 = scalar_lea.hbm %s2884_s6, %s1352_s23  ;;  %p2064_p9 = pneg %p2543_p12 }
  0xc9   : > { %s2062_s2 = scalar_lea.hbm %s2593_s17, 1536  ;;  %s2067_s22 = scalar_lea.hbm %s2884_s6, 3072 }
  0xca   : > { %p2063_p1 = scmp.ne.s32.totalorder %s2593_s17, %s2062_s2  ;;  %p2068_p0 = scmp.lt.u32.totalorder %s2593_s17, %s2884_s6 }
  0xcb   : > { %p2069_p4 = scmp.lt.u32.totalorder %s2067_s22, %s2062_s2  ;;  %p2071_p5 = scmp.lt.u32.totalorder %s2062_s2, %s2593_s17 }
  0xcc   : > { %p2065_p13 = pnand %p2064_p9, %p2063_p1 }
  0xcd   : > { %p2070_p8 = por %p2069_p4, %p2068_p0 }
  0xce   : > { %p2066_p11 = pneg %p2065_p13 }
  0xcf   : > { %p2072_p10 = por %p2071_p5, %p2070_p8 }
  0xd1   : > { %p2073_p6 = pnand %p2072_p10, %p2066_p11 }
  0xd3   : > { %2076 = shalt.err (!%p2073_p6)
}
  0xd4   : > { %s2077_s18 = scalar_lea.vmem %s2588_s25, 1536  ;;  %s2228_s12 = smov [#allocation14]  }
  0xd5   : > { %p2078_p3 = scmp.ne.s32.totalorder %s2588_s25, %s2077_s18  ;;  %s2082_s0 = sshll.u32 %s2228_s12, 4  ;;  %s2083_s0 = int_to_ptr.vmem [resolvable:$false] %s2082_s0 }
  0xd6   : > { %s2084_s7 = scalar_lea.vmem %s2083_s0, 3072  ;;  %p2085_p1 = scmp.lt.s32.totalorder %s2588_s25, %s2083_s0 }
  0xd7   : > { %p2080_p2 = pnand %p2078_p3, %p2064_p9  ;;  %p2086_p13 = scmp.lt.s32.totalorder %s2084_s7, %s2077_s18 }
  0xd9   : > { %p2081_p7 = pneg %p2080_p2  ;;  %p2087_p0 = por %p2086_p13, %p2085_p1 }
  0xdb   : > { %p2088_p4 = pnand %p2087_p0, %p2081_p7 }
  0xdd   : > { %2091 = shalt.err (!%p2088_p4)
}
  0xde   : > { %1816 = dma.hbm_to_vmem [thread:$0]  (!%p2543_p12), %s2593_s17, 1536, %s2588_s25, %s2597_s19, %s2958_s15, %s2958_s15, %s2957_s28  }
  0xdf   : > { %p2959_p9 = scmp.ne.s32.totalorder %s2925_s14, 0 }
  0xe0   : > { %p2960_p11 = scmp.eq.s32.totalorder (!%p2959_p9), %s2347_s13, 0 }
  0xe1   : > { %404 = sbr.rel (%p2959_p9) target bundleno = 948 (0x3b4), region = 48 }
  0xe8   : > { %2159 = dma.done.wait (%p2960_p11), [#allocation8], 16   ;;  %p2961_p8 = pmov %p2960_p11 }
  0xea   : > { %2161 = vsyncadd (%p2961_p8), [#allocation8], 4294967280  ;;  %p2962_p5 = pmov %p2961_p8 }
  0xec   : > { %2163 = dma.done.wait (%p2962_p5), [#allocation10], 32   ;;  %p2963_p10 = pmov %p2962_p5 }
  0xed   : > { %p2964_p6 = pmov %p2962_p5 }
  0xee   : > { %2165 = vsyncadd (%p2963_p10), [#allocation10], 4294967264 }
  0xef   : > { %2167 = dma.done.wait (%p2964_p6), [#allocation13], 16   ;;  %p2965_p12 = pmov %p2962_p5 }
  0xf0   : > { %s422_s14 = sand.u32 1, %s2200_s26   ;;  %p2966_p3 = scmp.ne.s32.totalorder %s2948_s21, 0 }
  0xf1   : > { %2169 = vsyncadd (%p2965_p12), [#allocation13], 4294967280  ;;  %s1765_s4 = smul.u32 96, %s422_s14  ;;  %s423_s28 = scalar_lea.sflag [#allocation6], %s422_s14 }
  0xf3   : > { %s2643_s15 = scalar_lea.vmem [#allocation14], %s1765_s4 }
  0xf4   : > { %2171 = dma.done.wait (%p2966_p3), %s423_s28, 1536  }
  0xf5   : > { %2173 = vsyncadd (%p2966_p3), %s423_s28, 4294965760  ;;  %s2967_s25 = sld [smem:[#allocation35_spill]]  ;;  %s431_s11 = sand.u32 1, %s2347_s13  }
  0xf6   : > { %s2651_s23 = sand.u32 1, %s2188_s1   ;;  %s432_s5 = scalar_lea.sflag [#allocation16], %s431_s11 }
  0xf7   : > { %s1364_s9 = sshll.u32 %s2651_s23, 5 }
  0xf8   : > { %s2654_s17 = scalar_lea.vmem [#allocation15], %s1364_s9 }
  0xfb   : > { %p2968_p2 = scmp.ne.s32.totalorder %s2967_s25, 0 }
  0xfd   : > { %2175 = dma.done.wait (%p2968_p2), %s432_s5, 2560  }
  0xfe   : > { %2177 = vsyncadd (%p2968_p2), %s432_s5, 4294964736  ;;  %s1365_s19 = sshll.u32 %s2651_s23, 7 }
  0xff   : > { %s2661_s21 = scalar_lea.vmem [#allocation17], %s1365_s19 }
 0x100   : > { %449 = sfence }
 0x101   : > { %v545_v0 = vld [vmem:[%s2643_s15] sm:$0xff]  ;;  %v546_v1 = vld [vmem:[%s2643_s15 + $0x8] sm:$0xff]  ;;  %v547_v2 = vld [vmem:[%s2643_s15 + $0x10] sm:$0xff]  ;;  %vm549_vm0 = vcmask 261120   ;;  %s2969_s13 = sld [smem:[#allocation32_spill]]  ;;  %v514_v54 = vlaneseq  ;;  %s738_s3 = sld [smem:[#allocation11]] }
 0x102   : > { %v1643_v3 = vpack.c.bf16 %v546_v1, %v545_v0  ;;  %v548_v4 = vld [vmem:[%s2643_s15 + $0x18] sm:$0xff]  ;;  %v2668_v5 = vld [vmem:[%s2654_s17] sm:$0xff]  ;;  %v1371_v8 = vld [vmem:[%s2643_s15 + $0x28] sm:$0xff]  ;;  %s732_s22 = sld [smem:[#allocation12]]  ;;  %v2229_v63 = vmov 0.0   ;;  %s1379_s20 = sld [smem:[#allocation11 + $0x1]] }
 0x103   : > { %v1647_v6 = vpack.c.bf16 %v548_v4, %v547_v2  ;;  %1495 = vmatprep.mubr.msk.f32.mxu0 %vm549_vm0, %v2668_v5  ;;  %v1370_v7 = vld [vmem:[%s2643_s15 + $0x20] sm:$0xff]  ;;  %v497_v10 = vld [vmem:[%s2661_s21 + $0x8] sm:$0xff]  ;;  %v498_v11 = vld [vmem:[%s2661_s21 + $0x10] sm:$0xff]  ;;  %v515_v55 = vshrl.u32 %v514_v54, 7  ;;  %v526_v57 = vand.u32 127, %v514_v54  ;;  %s1766_s16 = smul.u32 96, %s2651_s23 }
 0x104   : > { %1644 = vmatprep.subr.bf16.mxu0 %v1643_v3  ;;  %v496_v9 = vld [vmem:[%s2661_s21] sm:$0xff]  ;;  %v1683_v12 = vpack.c.bf16 %v1371_v8, %v1370_v7  ;;  %v499_v14 = vld [vmem:[%s2661_s21 + $0x18] sm:$0xff]  ;;  %v1372_v15 = vld [vmem:[%s2643_s15 + $0x30] sm:$0xff]  ;;  %s1378_s18 = sld [smem:[#allocation12 + $0x1]]  ;;  %s1393_s0 = sld [smem:[#allocation11 + $0x2]] }
 0x105   : > { %1646 = vmatpush3.bf16.msra.mxu0 %v1643_v3  ;;  %v2677_v13 = vpack.c.bf16 %v497_v10, %v496_v9  ;;  %v1373_v16 = vld [vmem:[%s2643_s15 + $0x38] sm:$0xff]  ;;  %v2682_v17 = vpack.c.bf16 %v499_v14, %v498_v11  ;;  %v500_v18 = vld [vmem:[%s2661_s21 + $0x20] sm:$0xff]  ;;  %v501_v19 = vld [vmem:[%s2661_s21 + $0x28] sm:$0xff]  ;;  %v516_v56 = vadd.s32 8, %v515_v55  ;;  %v518_v61 = vadd.s32 24, %v515_v55  ;;  %s2796_s12 = scalar_lea.vmem [#allocation18], %s1766_s16 }
 0x106   : > { %1648 = vmatprep.subr.bf16.mxu0 %v1647_v6  ;;  %v2688_v20 = vld [vmem:[%s2654_s17 + $0x8] sm:$0xff]  ;;  %v2692_v21 = vld [vmem:[%s2654_s17 + $0x10] sm:$0xff]  ;;  %v1687_v22 = vpack.c.bf16 %v1373_v16, %v1372_v15  ;;  %v2695_v23 = vpack.c.bf16 %v501_v19, %v500_v18  ;;  %v503_v25 = vld [vmem:[%s2661_s21 + $0x38] sm:$0xff]  ;;  %v517_v62 = vadd.s32 16, %v515_v55  ;;  %s1392_s7 = sld [smem:[#allocation12 + $0x2]]  ;;  %s2972_s4 = sld [smem:[#allocation34_spill]] }
 0x107   : > { %1652 = vmatprep.subr.bf16.mxu1 %v2677_v13  ;;  %v502_v24 = vld [vmem:[%s2661_s21 + $0x30] sm:$0xff]  ;;  %v2704_v26 = vld [vmem:[%s2654_s17 + $0x18] sm:$0xff]  ;;  %v504_v28 = vld [vmem:[%s2661_s21 + $0x40] sm:$0xff]  ;;  %s512_s2 = sld [smem:[#allocation5 + %s2969_s13]]  ;;  %v739_v1 = vstv %s738_s3  ;;  %s1767_s14 = smul.u32 1536, %s2969_s13 }
 0x108   : > { %1654 = vmatpush3.bf16.msra.mxu1 %v2677_v13  ;;  %v2708_v27 = vpack.c.bf16 %v503_v25, %v502_v24  ;;  %v505_v29 = vld [vmem:[%s2661_s21 + $0x48] sm:$0xff]  ;;  %v506_v31 = vld [vmem:[%s2661_s21 + $0x50] sm:$0xff]  ;;  %v507_v32 = vld [vmem:[%s2661_s21 + $0x58] sm:$0xff]  ;;  %s513_s24 = sld [smem:[#allocation9 + %s2969_s13]]  ;;  %v733_v3 = vstv %s732_s22  ;;  %s1161_s28 = sshll.u32 %s2796_s12, 4  ;;  %s2819_s28 = int_to_ptr.vmem [resolvable:$true] %s1161_s28 }
 0x109   : > { %1650 = vmatpush3.bf16.msra.mxu0 %v1647_v6  ;;  %1656 = vmatprep.subr.bf16.mxu1 %v2682_v17  ;;  %v2719_v30 = vpack.c.bf16 %v505_v29, %v504_v28  ;;  %v2731_v33 = vpack.c.bf16 %v507_v32, %v506_v31  ;;  %v508_v34 = vld [vmem:[%s2661_s21 + $0x60] sm:$0xff]  ;;  %v509_v35 = vld [vmem:[%s2661_s21 + $0x68] sm:$0xff]  ;;  %v510_v37 = vld [vmem:[%s2661_s21 + $0x70] sm:$0xff]  ;;  %s2973_s11 = sld [smem:[#allocation43_spill]]  ;;  %s1145_s5 = scalar_lea.sflag [#allocation7], %s2651_s23 }
 0x10a   : > { %1684 = vmatprep.subr.bf16.mxu0 %v1683_v12  ;;  %v1675_v36 = vpack.c.bf16 %v509_v35, %v508_v34  ;;  %v511_v38 = vld [vmem:[%s2661_s21 + $0x78] sm:$0xff]  ;;  %v1384_v40 = vld [vmem:[%s2643_s15 + $0x40] sm:$0xff]  ;;  %v1385_v41 = vld [vmem:[%s2643_s15 + $0x48] sm:$0xff]  ;;  %s2092_s17 = scalar_lea.vmem %s2819_s28, 1536  ;;  %s2230_s19 = smov [#allocation18]  }
 0x10b   : > { %v1679_v39 = vpack.c.bf16 %v511_v38, %v510_v37  ;;  %v1723_v42 = vpack.c.bf16 %v1385_v41, %v1384_v40  ;;  %v1386_v47 = vld [vmem:[%s2643_s15 + $0x50] sm:$0xff]  ;;  %v1387_v48 = vld [vmem:[%s2643_s15 + $0x58] sm:$0xff]  ;;  %p2093_p7 = scmp.ne.s32.totalorder %s2819_s28, %s2092_s17  ;;  %s2096_s21 = sshll.u32 %s2230_s19, 4  ;;  %s2097_s21 = int_to_ptr.vmem [resolvable:$false] %s2096_s21 }
 0x10c   : > { %1496 = vmatmul.mubr.msk.f32.vlgmr.msra.gmra.mrb[0].mxu0 %vm549_vm0, %v2688_v20  ;;  %1658 = vmatpush3.bf16.msra.mxu1 %v2682_v17  ;;  %v1727_v51 = vpack.c.bf16 %v1387_v48, %v1386_v47  ;;  %p2974_p1 = scmp.ne.s32.totalorder %s2972_s4, 0  ;;  %s2098_s13 = scalar_lea.vmem %s2097_s21, 3072 }
 0x10d   : > { %1686 = vmatpush3.bf16.msra.mxu0 %v1683_v12  ;;  %1498 = vmatprep.mubr.msk.f32.mxu0 %vm549_vm0, %v2692_v21  ;;  %v530_v58 = vstv %s512_s2  ;;  %p2099_p4 = scmp.lt.s32.totalorder %s2819_s28, %s2097_s21  ;;  %p2100_p9 = scmp.lt.s32.totalorder %s2098_s13, %s2092_s17 }
 0x10e   : > { %1688 = vmatprep.subr.bf16.mxu0 %v1687_v22  ;;  %1660 = vmatprep.subr.bf16.mxu1 %v2695_v23  ;;  %v535_v59 = vstv %s513_s24  ;;  %vm532_vm1 = vcmp.lt.s32.totalorder %v516_v56, %v530_v58  ;;  %vm531_vm3 = vcmp.lt.s32.totalorder %v515_v55, %v530_v58  ;;  %vm534_vm6 = vcmp.lt.s32.totalorder %v518_v61, %v530_v58  ;;  %p2094_p13 = pnand %p2093_p7, %p2974_p1 }
 0x10f   : > { %vm2777_vm2 = vcmp.lt.s32.totalorder %v526_v57, %v535_v59  ;;  %vm533_vm7 = vcmp.lt.s32.totalorder %v517_v62, %v530_v58  ;;  %s2817_s9 = scalar_lea.hbm %s2973_s11, %s1767_s14  ;;  %p2101_p11 = por %p2100_p9, %p2099_p4 }
 0x110   : > { %1499 = vmatmul.mubr.msk.f32.gmra.mrb[2].mxu0 %vm549_vm0, %v2704_v26  ;;  %1662 = vmatpush3.bf16.msra.mxu1 %v2695_v23  ;;  %vm538_vm4 = vmand %vm532_vm1, %vm2777_vm2  ;;  %p2095_p0 = pneg %p2094_p13 }
 0x111   : > { %1690 = vmatpush3.bf16.msra.mxu0 %v1687_v22  ;;  %1547 = vmatprep.mubr.msk.f32.mxu0 %vm549_vm0, %v2668_v5  ;;  %vm537_vm5 = vmand %vm531_vm3, %vm2777_vm2  ;;  %v2785_v0 = vsel %vm538_vm4, 1.0, %v2229_v63 }
 0x112   : > { %1692 = vmatprep.subr.bf16.mxu0 %v2677_v13  ;;  %1664 = vmatprep.subr.bf16.mxu1 %v2708_v27  ;;  %v2787_v2 = vsel %vm537_vm5, 1.0, %v2229_v63  ;;  %vm540_vm8 = vmand %vm534_vm6, %vm2777_vm2  ;;  %v741_v4 = vmul.f32 %v739_v1, %v2785_v0  ;;  %p2102_p8 = pnand %p2101_p11, %p2095_p0 }
 0x113   : > { %vm539_vm9 = vmand %vm533_vm7, %vm2777_vm2  ;;  %v740_v6 = vmul.f32 %v739_v1, %v2787_v2  ;;  %v544_v7 = vsel %vm540_vm8, 1.0, %v2229_v63 }
 0x114   : > { %1548 = vmatmul.mubr.msk.f32.vlgmr.msra.gmra.mrb[4].mxu0 %vm549_vm0, %v2688_v20  ;;  %1666 = vmatpush3.bf16.msra.mxu1 %v2708_v27  ;;  %v543_v10 = vsel %vm539_vm9, 1.0, %v2229_v63 }
 0x115   : > { %1550 = vmatprep.mubr.msk.f32.mxu0 %vm549_vm0, %v2692_v21  ;;  %1694 = vmatpush3.bf16.msra.mxu0 %v2677_v13  ;;  %v742_v16 = vmul.f32 %v739_v1, %v543_v10 }
 0x116   : > { %1696 = vmatprep.subr.bf16.mxu0 %v2682_v17  ;;  %1668 = vmatprep.subr.bf16.mxu1 %v2719_v30 }
 0x118   : > { %1551 = vmatmul.mubr.msk.f32.gmra.mrb[6].mxu0 %vm549_vm0, %v2704_v26  ;;  %1670 = vmatpush3.bf16.msra.mxu1 %v2719_v30 }
 0x119   : > { %1698 = vmatpush3.bf16.msra.mxu0 %v2682_v17  ;;  %1672 = vmatprep.subr.bf16.mxu1 %v2731_v33 }
 0x11a   : > { %1700 = vmatprep.subr.bf16.mxu0 %v2695_v23 }
 0x11c   : > { %1674 = vmatpush3.bf16.msra.mxu1 %v2731_v33 }
 0x11d   : > { %1702 = vmatpush3.bf16.msra.mxu0 %v2695_v23  ;;  %1676 = vmatprep.subr.bf16.mxu1 %v1675_v36 }
 0x11e   : > { %1704 = vmatprep.subr.bf16.mxu0 %v2708_v27 }
 0x120   : > { %1678 = vmatpush3.bf16.msra.mxu1 %v1675_v36 }
 0x121   : > { %1706 = vmatpush3.bf16.msra.mxu0 %v2708_v27  ;;  %1680 = vmatprep.subr.bf16.mxu1 %v1679_v39 }
 0x122   : > { %1708 = vmatprep.subr.bf16.mxu0 %v2719_v30 }
 0x124   : > { %1682 = vmatpush3.bf16.msra.mxu1 %v1679_v39 }
 0x125   : > { %1710 = vmatpush3.bf16.msra.mxu0 %v2719_v30  ;;  %1732 = vmatprep.subr.bf16.mxu1 %v2677_v13 }
 0x126   : > { %1712 = vmatprep.subr.bf16.mxu0 %v2731_v33 }
 0x129   : > { %1714 = vmatpush3.bf16.msra.mxu0 %v2731_v33 }
 0x12a   : > { %1716 = vmatprep.subr.bf16.mxu0 %v1675_v36 }
 0x12d   : > { %1718 = vmatpush3.bf16.msra.mxu0 %v1675_v36 }
 0x12e   : > { %1720 = vmatprep.subr.bf16.mxu0 %v1679_v39 }
 0x131   : > { %1722 = vmatpush3.bf16.msra.mxu0 %v1679_v39 }
 0x132   : > { %1724 = vmatprep.subr.bf16.mxu0 %v1723_v42 }
 0x1df   : > { %v1497_v43 = vpop.f32.mrb[0].mxu0 }
 0x1e0   : > { %v628_v44 = vpop.f32.mrb[1].mxu0 }
 0x1e1   : > { %1533 = vmatprep.mubr.f32.mxu1 %v628_v44  ;;  %v1130_v44 = vstv %s1393_s0 }
 0x1e2   : > { %1534 = vmatmul.mubr.f32.vlgmr.msra.gmra.mrb[0].mxu1 %v1497_v43  ;;  %v1131_v48 = vmul.f32 %v1130_v44, %v2787_v2  ;;  %v1133_v56 = vmul.f32 %v1130_v44, %v543_v10 }
 0x1e3   : > { %v1500_v45 = vpop.f32.mrb[2].mxu0  ;;  %1734 = vmatpush3.bf16.msra.mxu1 %v2677_v13  ;;  %v743_v13 = vmul.f32 %v739_v1, %v544_v7 }
 0x1e4   : > { %v638_v46 = vpop.f32.mrb[3].mxu0  ;;  %1736 = vmatprep.subr.bf16.mxu1 %v2682_v17 }
 0x1e5   : > { %1536 = vmatprep.mubr.f32.mxu1 %v638_v46  ;;  %v1132_v46 = vmul.f32 %v1130_v44, %v2785_v0 }
 0x1e6   : > { %1537 = vmatmul.mubr.f32.gmra.mrb[2].mxu1 %v1500_v45  ;;  %v1124_v45 = vstv %s1392_s7 }
 0x1e7   : > { %v1549_v49 = vpop.f32.mrb[4].mxu0  ;;  %1738 = vmatpush3.bf16.msra.mxu1 %v2682_v17  ;;  %v934_v17 = vstv %s1379_s20 }
 0x1e8   : > { %v823_v50 = vpop.f32.mrb[5].mxu0  ;;  %1740 = vmatprep.subr.bf16.mxu1 %v2695_v23  ;;  %v938_v31 = vmul.f32 %v934_v17, %v544_v7  ;;  %v937_v34 = vmul.f32 %v934_v17, %v543_v10 }
 0x1e9   : > { %1585 = vmatprep.mubr.f32.mxu0 %v823_v50 }
 0x1ea   : > { %1586 = vmatmul.mubr.f32.vlgmr.msra.gmra.mrb[8].mxu0 %v1549_v49 }
 0x1eb   : > { %v1552_v52 = vpop.f32.mrb[6].mxu0  ;;  %1726 = vmatpush3.bf16.msra.mxu0 %v1723_v42  ;;  %1742 = vmatpush3.bf16.msra.mxu1 %v2695_v23  ;;  %v936_v23 = vmul.f32 %v934_v17, %v2785_v0 }
 0x1ec   : > { %v833_v53 = vpop.f32.mrb[7].mxu0  ;;  %1728 = vmatprep.subr.bf16.mxu0 %v1727_v51  ;;  %1744 = vmatprep.subr.bf16.mxu1 %v2708_v27 }
 0x1ed   : > { %1588 = vmatprep.mubr.f32.mxu0 %v833_v53  ;;  %v1134_v53 = vmul.f32 %v1130_v44, %v544_v7 }
 0x1ee   : > { %1589 = vmatmul.mubr.f32.gmra.mrb[10].mxu0 %v1552_v52 }
 0x1ef   : > { %1730 = vmatpush3.bf16.msra.mxu0 %v1727_v51  ;;  %1599 = vmatprep.mubr.msk.f32.mxu0 %vm549_vm0, %v2668_v5 }
 0x1f0   : > { %1746 = vmatpush3.bf16.msra.mxu1 %v2708_v27 }
 0x1f1   : > { %1748 = vmatprep.subr.bf16.mxu1 %v2719_v30 }
 0x1f2   : > { %1600 = vmatmul.mubr.msk.f32.vlgmr.msra.gmra.mrb[12].mxu0 %vm549_vm0, %v2688_v20 }
 0x1f3   : > { %1602 = vmatprep.mubr.msk.f32.mxu0 %vm549_vm0, %v2692_v21  ;;  %v928_v21 = vstv %s1378_s18 }
 0x1f4   : > { %1750 = vmatpush3.bf16.msra.mxu1 %v2719_v30 }
 0x1f5   : > { %1752 = vmatprep.subr.bf16.mxu1 %v2731_v33 }
 0x1f6   : > { %1603 = vmatmul.mubr.msk.f32.gmra.mrb[14].mxu0 %vm549_vm0, %v2704_v26  ;;  %v935_v26 = vmul.f32 %v934_v17, %v2787_v2 }
 0x1f8   : > { %1754 = vmatpush3.bf16.msra.mxu1 %v2731_v33 }
 0x1f9   : > { %1756 = vmatprep.subr.bf16.mxu1 %v1675_v36 }
 0x1fc   : > { %1758 = vmatpush3.bf16.msra.mxu1 %v1675_v36 }
 0x1fd   : > { %1760 = vmatprep.subr.bf16.mxu1 %v1679_v39 }
 0x200   : > { %1762 = vmatpush3.bf16.msra.mxu1 %v1679_v39 }
 0x2b5   : > { %v1535_v5 = vpop.f32.mrb[0].mxu1 }
 0x2b6   : > { %v735_v8 = vmul.f32 %v1535_v5, %v733_v3  ;;  %v713_v9 = vpop.f32.mrb[1].mxu1 }
 0x2b7   : > { %v734_v11 = vmul.f32 %v733_v3, %v713_v9 }
 0x2b8   : > { %v745_v12 = vsub.f32 %v735_v8, %v741_v4 }
 0x2b9   : > { %v744_v14 = vsub.f32 %v734_v11, %v740_v6  ;;  %v1538_v15 = vpop.f32.mrb[2].mxu1 }
 0x2ba   : > { %749 = vst [vmem:[%s2796_s12 + $0x8] sm:$0xff] %v745_v12  ;;  %v737_v18 = vmul.f32 %v1538_v15, %v733_v3  ;;  %v723_v19 = vpop.f32.mrb[3].mxu1 }
 0x2bb   : > { %748 = vst [vmem:[%s2796_s12] sm:$0xff] %v744_v14  ;;  %v736_v20 = vmul.f32 %v733_v3, %v723_v19 }
 0x2bc   : > { %v747_v22 = vsub.f32 %v737_v18, %v743_v13 }
 0x2bd   : > { %v746_v24 = vsub.f32 %v736_v20, %v742_v16  ;;  %v1587_v25 = vpop.f32.mrb[8].mxu0 }
 0x2be   : > { %751 = vst [vmem:[%s2796_s12 + $0x18] sm:$0xff] %v747_v22  ;;  %v930_v27 = vmul.f32 %v1587_v25, %v928_v21  ;;  %v908_v28 = vpop.f32.mrb[9].mxu0 }
 0x2bf   : > { %750 = vst [vmem:[%s2796_s12 + $0x10] sm:$0xff] %v746_v24  ;;  %v929_v29 = vmul.f32 %v928_v21, %v908_v28 }
 0x2c0   : > { %v940_v30 = vsub.f32 %v930_v27, %v936_v23 }
 0x2c1   : > { %v939_v32 = vsub.f32 %v929_v29, %v935_v26  ;;  %v1590_v33 = vpop.f32.mrb[10].mxu0 }
 0x2c2   : > { %1381 = vst [vmem:[%s2796_s12 + $0x28] sm:$0xff] %v940_v30  ;;  %v932_v35 = vmul.f32 %v1590_v33, %v928_v21  ;;  %v918_v36 = vpop.f32.mrb[11].mxu0 }
 0x2c3   : > { %1380 = vst [vmem:[%s2796_s12 + $0x20] sm:$0xff] %v939_v32  ;;  %v931_v37 = vmul.f32 %v928_v21, %v918_v36 }
 0x2c4   : > { %v942_v38 = vsub.f32 %v932_v35, %v938_v31 }
 0x2c5   : > { %v941_v39 = vsub.f32 %v931_v37, %v937_v34  ;;  %v1601_v40 = vpop.f32.mrb[12].mxu0 }
 0x2c6   : > { %1383 = vst [vmem:[%s2796_s12 + $0x38] sm:$0xff] %v942_v38  ;;  %v1019_v41 = vpop.f32.mrb[13].mxu0 }
 0x2c7   : > { %1382 = vst [vmem:[%s2796_s12 + $0x30] sm:$0xff] %v941_v39  ;;  %1637 = vmatprep.mubr.f32.mxu1 %v1019_v41 }
 0x2c8   : > { %1638 = vmatmul.mubr.f32.vlgmr.msra.gmra.mrb[4].mxu1 %v1601_v40 }
 0x2c9   : > { %v1604_v42 = vpop.f32.mrb[14].mxu0 }
 0x2ca   : > { %v1029_v43 = vpop.f32.mrb[15].mxu0 }
 0x2cb   : > { %1640 = vmatprep.mubr.f32.mxu1 %v1029_v43 }
 0x2cc   : > { %1641 = vmatmul.mubr.f32.gmra.mrb[6].mxu1 %v1604_v42 }
 0x39b   : > { %v1639_v47 = vpop.f32.mrb[4].mxu1 }
 0x39c   : > { %v1126_v49 = vmul.f32 %v1639_v47, %v1124_v45  ;;  %v1104_v50 = vpop.f32.mrb[5].mxu1 }
 0x39d   : > { %v1125_v51 = vmul.f32 %v1124_v45, %v1104_v50 }
 0x39e   : > { %v1136_v52 = vsub.f32 %v1126_v49, %v1132_v46 }
 0x39f   : > { %v1135_v54 = vsub.f32 %v1125_v51, %v1131_v48  ;;  %v1642_v55 = vpop.f32.mrb[6].mxu1 }
 0x3a0   : > { %1395 = vst [vmem:[%s2796_s12 + $0x48] sm:$0xff] %v1136_v52  ;;  %v1128_v57 = vmul.f32 %v1642_v55, %v1124_v45  ;;  %v1114_v58 = vpop.f32.mrb[7].mxu1 }
 0x3a1   : > { %1394 = vst [vmem:[%s2796_s12 + $0x40] sm:$0xff] %v1135_v54  ;;  %v1127_v59 = vmul.f32 %v1124_v45, %v1114_v58 }
 0x3a2   : > { %v1138_v60 = vsub.f32 %v1128_v57, %v1134_v53 }
 0x3a3   : > { %v1137_v61 = vsub.f32 %v1127_v59, %v1133_v56 }
 0x3a4   : > { %1397 = vst [vmem:[%s2796_s12 + $0x58] sm:$0xff] %v1138_v60 }
 0x3a5   : > { %1396 = vst [vmem:[%s2796_s12 + $0x50] sm:$0xff] %v1137_v61 }
 0x3a6   : > { %2105 = shalt.err (!%p2102_p8)
}
 0x3a7   : > { %s2106_s2 = scalar_lea.hbm %s2817_s9, 1536  ;;  %s2110_s22 = scalar_lea.hbm %s2973_s11, 3072 }
 0x3a8   : > { %p2107_p5 = scmp.ne.s32.totalorder %s2817_s9, %s2106_s2  ;;  %p2111_p12 = scmp.lt.u32.totalorder %s2817_s9, %s2973_s11 }
 0x3a9   : > { %p2112_p3 = scmp.lt.u32.totalorder %s2110_s22, %s2106_s2  ;;  %p2114_p7 = scmp.lt.u32.totalorder %s2106_s2, %s2817_s9 }
 0x3aa   : > { %p2108_p10 = pnand %p2107_p5, %p2974_p1 }
 0x3ab   : > { %p2113_p2 = por %p2112_p3, %p2111_p12 }
 0x3ac   : > { %p2109_p6 = pneg %p2108_p10 }
 0x3ad   : > { %p2115_p13 = por %p2114_p7, %p2113_p2 }
 0x3af   : > { %p2116_p0 = pnand %p2115_p13, %p2109_p6 }
 0x3b1   : > { %2119 = shalt.err (!%p2116_p0)
}
 0x3b2   : > { %s2231_s18 = smov 128   ;;  %s2232_s12 = smov 8  }
 0x3b3   : > { %1794 = dma.vmem_to_hbm [thread:$0]  (%p2974_p1), %s2819_s28, 1536, %s2817_s9, %s1145_s5, %s2231_s18, %s2231_s18, %s2232_s12  }
 0x3b4 PF: > { %s2975_s0 = sld [smem:[#allocation30_spill]]  ;;  %s2976_s7 = sld [smem:[#allocation37_spill]] }
 0x3b5   : > { %p2978_p9 = scmp.ge.s32.totalorder %s2216_s30, 2 }
 0x3ba   : > { %s1176_s14 = sand.u32 1, %s2975_s0   ;;  %p2977_p4 = scmp.ne.s32.totalorder %s2976_s7, 0 }
 0x3bb   : > { %s1177_s15 = scalar_lea.sflag [#allocation7], %s1176_s14 }
 0x3bc   : > { %p1824_p11 = pnand %p2978_p9, %p2977_p4 }
 0x3be   : > { %2179 = dma.done.wait (!%p1824_p11), %s1177_s15, 1536  }
 0x3bf   : > { %2181 = vsyncadd (!%p1824_p11), %s1177_s15, 4294965760  ;;  %s39_s30 = sadd.s32 1, %s2216_s30   ;;  %s2979_s25 = sld [smem:[#allocation31_spill]] }
 0x3c0   : > { %p36_p8 = scmp.ge.s32.totalorder %s39_s30, 4   ;;  %s2980_s24 = sld [smem:[#allocation36_spill]] }
 0x3c1   : > { %s2981_s23 = sld [smem:[#allocation33_spill]]  ;;  %s2982_s0 = smov %s2188_s1 }
 0x3c2   : > { %s2987_s28 = smov %s2212_s29  ;;  %38 = sbr.rel (!%p36_p8) target bundleno = 36 (0x24), region = 138 }
 0x3c5   : > { %s2983_s1 = smov %s2979_s25  ;;  %s2984_s25 = smov %s2200_s26 }
 0x3c6   : > { %s2985_s26 = smov %s2204_s27  ;;  %s2986_s27 = smov %s2527_s10 }
 0x3c7   : > { %s2988_s29 = smov %s2981_s23 }
 0x3c9   :  { %1182 = vsyncpa [#allocation6], 1 }
 0x3ca   :  { %1184 = vsyncpa [#allocation6 + $0x1], 1 }
 0x3cb   :  { %1185 = vsyncpa [#allocation16], 1 }
 0x3cc   :  { %1187 = vsyncpa [#allocation16 + $0x1], 1 }
 0x3cd   :  { %1188 = vsyncpa [#allocation7], 1 }
 0x3ce   :  { %1190 = vsyncpa [#allocation7 + $0x1], 1 }
 0x3cf   :  { %1191 = vsyncpa [#allocation8], 1 }
 0x3d0   :  { %1193 = vsyncpa [#allocation8 + $0x1], 1 }
 0x3d1   :  { %1194 = vsyncpa [#allocation10], 1 }
 0x3d2   :  { %1195 = vsyncpa [#allocation13], 1 }

</bundles_post_ra>
